<compile_context>
chip_gen: v5e
topology: v5e:2x2
jax: 0.10.0
libtpu: 0.0.40
codegen_flags: <defaults>
</compile_context>

<pallas_src>
import functools

import jax
import jax.numpy as jnp
from jax import lax
from jax.experimental import pallas as pl
from jax.experimental.pallas import tpu as pltpu

BN_EPS = 1e-5      # nn.BatchNorm1d default eps
GINE_EPS = 0.0     # GINEConv default eps (non-trainable)
LANE = 128

# bf16 operands on the real TPU MXU (fp32 accumulate everywhere); plain fp32
# when the backend is not a TPU (e.g. CPU interpret mode, which does not
# implement BF16 x BF16 = F32 dots).
_ON_TPU = jax.default_backend() == "tpu"
COMPUTE_DTYPE = jnp.bfloat16 if _ON_TPU else jnp.float32
CD_BYTES = 2 if _ON_TPU else 4

VMEM_BUDGET = 40 * 1024 * 1024   # conservative: fits v7x's 64 MiB with headroom


def _round_up(v, m):
    return ((v + m - 1) // m) * m


def _pad_to(a, shape):
    pads = [(0, t - s) for s, t in zip(a.shape, shape)]
    return jnp.pad(a, pads)


# ---------------------------------------------------------------------------
# Pallas kernel: one full layer (GINEConv -> ReLU -> BatchNorm1d) + pool.
# Grid: edge tiles (reduction axis, "arbitrary"), VMEM aggr accumulator.
# ---------------------------------------------------------------------------
def _gine_layer_kernel(n_edges,
                       src_ref, dst_ref,                      # SMEM (prefetch)
                       x_ref, ea_ref, p_ref,
                       we_ref, be_ref, w1_ref, b1_ref, w2_ref, b2_ref,
                       gamma_ref, beta_ref,
                       z_ref, g_ref,
                       aggr_ref, lin_ref):
    e = pl.program_id(0)
    e_tile = lin_ref.shape[0]

    @pl.when(e == 0)
    def _():
        aggr_ref[...] = jnp.zeros_like(aggr_ref)

    # Edge linear for this tile: edge_attr @ We + be  (bf16 MXU path on TPU,
    # fp32 accumulate).  Stored in VMEM scratch so rows can be indexed
    # dynamically by the per-edge loop below.
    lin_ref[...] = (
        jnp.dot(ea_ref[...], we_ref[...], preferred_element_type=jnp.float32)
        + be_ref[...])

    # Index-driven gather + message ReLU + scatter-add: O(E * Din) work,
    # no O(E * N) one-hot operands.
    base = e * e_tile
    n_valid = jnp.maximum(jnp.minimum(e_tile, n_edges - base), 0)

    def edge_body(i, carry):
        s = src_ref[base + i]                                  # SMEM scalar
        d = dst_ref[base + i]                                  # SMEM scalar
        msg = jnp.maximum(x_ref[pl.ds(s, 1), :] + lin_ref[pl.ds(i, 1), :], 0.0)
        aggr_ref[pl.ds(d, 1), :] = aggr_ref[pl.ds(d, 1), :] + msg
        return carry

    lax.fori_loop(0, n_valid, edge_body, 0)

    # ---- finalize on the last edge tile -------------------------------------
    @pl.when(e == pl.num_programs(0) - 1)
    def _():
        x = x_ref[...]
        h = (1.0 + GINE_EPS) * x + aggr_ref[...]
        # GIN MLP: Linear -> ReLU -> Linear (bf16 operands on TPU, fp32 acc).
        h = jnp.maximum(
            jnp.dot(h.astype(w1_ref.dtype), w1_ref[...],
                    preferred_element_type=jnp.float32) + b1_ref[...], 0.0)
        h = jnp.dot(h.astype(w2_ref.dtype), w2_ref[...],
                    preferred_element_type=jnp.float32) + b2_ref[...]
        # F.relu after conv
        h = jnp.maximum(h, 0.0)
        # BatchNorm1d (training-mode batch stats, biased variance),
        # two-pass centered formulation for numerical robustness.
        n = h.shape[0]
        mean = jnp.sum(h, axis=0, keepdims=True) * (1.0 / n)
        cen = h - mean
        var = jnp.sum(cen * cen, axis=0, keepdims=True) * (1.0 / n)
        scale = gamma_ref[...] * lax.rsqrt(var + BN_EPS)
        z = cen * scale + beta_ref[...]
        z_ref[...] = z
        # fused global_add_pool: P [B, N] @ z [N, Hpad]
        g_ref[...] = jnp.dot(p_ref[...], z, preferred_element_type=jnp.float32)


# ---------------------------------------------------------------------------
# Wrappers
# ---------------------------------------------------------------------------
def _choose_tile_and_vmem(E, N, B, ed_pad, din_pad, h_pad):
    """Largest edge tile keeping the per-layer VMEM footprint under budget,
    plus a matching vmem_limit_bytes (sized for v7x's 64 MiB VMEM)."""
    f32 = 4
    fixed = (
        2 * f32 * N * din_pad                                   # resident x
        + f32 * N * din_pad                                     # aggr scratch
        + 2 * f32 * B * N                                       # pool operator
        + 2 * CD_BYTES * (ed_pad * din_pad + din_pad * h_pad + h_pad * h_pad)
        + 2 * f32 * (5 * h_pad + din_pad)                       # biases/gamma/beta
        + 2 * f32 * (N * h_pad + B * h_pad))                    # z / pooled outs
    per_edge = 2 * CD_BYTES * ed_pad + f32 * din_pad            # ea stream + lin
    margin = 2 * 1024 * 1024
    avail = VMEM_BUDGET - fixed - margin
    e_tile = avail // per_edge if avail > 0 else 16
    e_tile = min(int(e_tile), 2048, _round_up(max(E, 1), 16))
    e_tile = max((e_tile // 16) * 16, 16)                       # bf16 sublane pack
    need = fixed + per_edge * e_tile + margin
    vmem_limit = int(min(max(need, 16 * 1024 * 1024), 96 * 1024 * 1024))
    return e_tile, vmem_limit


def gine_layer(x_pad, ea_cd, src_pad, dst_pad, P, params_pad, *,
               n_edges, e_tile, vmem_limit):
    """One fused layer. Feature dims already padded to 128 lanes."""
    We, be, W1, b1, W2, b2, gamma, beta = params_pad
    N, Din = x_pad.shape
    E_pad, ED = ea_cd.shape
    B = P.shape[0]
    H = W2.shape[1]
    num_e_tiles = E_pad // e_tile

    grid_spec = pltpu.PrefetchScalarGridSpec(
        num_scalar_prefetch=2,                                  # src, dst -> SMEM
        grid=(num_e_tiles,),
        in_specs=[
            pl.BlockSpec((N, Din), lambda e, s, d: (0, 0)),      # x (resident)
            pl.BlockSpec((e_tile, ED), lambda e, s, d: (e, 0)),  # edge_attr tile
            pl.BlockSpec((B, N), lambda e, s, d: (0, 0)),        # pool operator
            pl.BlockSpec((ED, Din), lambda e, s, d: (0, 0)),     # We
            pl.BlockSpec((1, Din), lambda e, s, d: (0, 0)),      # be
            pl.BlockSpec((Din, H), lambda e, s, d: (0, 0)),      # W1
            pl.BlockSpec((1, H), lambda e, s, d: (0, 0)),        # b1
            pl.BlockSpec((H, H), lambda e, s, d: (0, 0)),        # W2
            pl.BlockSpec((1, H), lambda e, s, d: (0, 0)),        # b2
            pl.BlockSpec((1, H), lambda e, s, d: (0, 0)),        # gamma
            pl.BlockSpec((1, H), lambda e, s, d: (0, 0)),        # beta
        ],
        out_specs=(
            pl.BlockSpec((N, H), lambda e, s, d: (0, 0)),        # z (lane-dense)
            pl.BlockSpec((B, H), lambda e, s, d: (0, 0)),        # pooled
        ),
        scratch_shapes=[
            pltpu.VMEM((N, Din), jnp.float32),                   # aggr accumulator
            pltpu.VMEM((e_tile, Din), jnp.float32),              # edge-linear tile
        ],
    )

    z_pad, g_pad = pl.pallas_call(
        functools.partial(_gine_layer_kernel, n_edges),
        grid_spec=grid_spec,
        out_shape=(jax.ShapeDtypeStruct((N, H), jnp.float32),
                   jax.ShapeDtypeStruct((B, H), jnp.float32)),
        compiler_params=pltpu.CompilerParams(
            dimension_semantics=("arbitrary",),                  # edge reduction
            vmem_limit_bytes=vmem_limit),
    )(src_pad, dst_pad, x_pad, ea_cd, P, We, be, W1, b1, W2, b2, gamma, beta)
    return z_pad, g_pad


def _pad_layer_params(p, ed_pad, din_pad, h_pad):
    We, be, W1, b1, W2, b2, gamma, beta = p
    return (_pad_to(We, (ed_pad, din_pad)).astype(COMPUTE_DTYPE),
            _pad_to(be, (1, din_pad)),
            _pad_to(W1, (din_pad, h_pad)).astype(COMPUTE_DTYPE),
            _pad_to(b1, (1, h_pad)),
            _pad_to(W2, (h_pad, h_pad)).astype(COMPUTE_DTYPE),
            _pad_to(b2, (1, h_pad)),
            _pad_to(gamma, (1, h_pad)),
            _pad_to(beta, (1, h_pad)))


def init_gconv_params(key, node_dim, edge_dim, hidden_dim, num_layers):
    """Deterministic parameter init (true shapes, matching the PyTorch module)."""
    params = []
    for i in range(num_layers):
        din = node_dim if i == 0 else hidden_dim
        key, k1, k2, k3, k4, k5, k6 = jax.random.split(key, 7)
        We = jax.random.normal(k1, (edge_dim, din), jnp.float32) * 0.1
        be = jax.random.normal(k2, (1, din), jnp.float32) * 0.1
        W1 = jax.random.normal(k3, (din, hidden_dim), jnp.float32) * 0.1
        b1 = jax.random.normal(k4, (1, hidden_dim), jnp.float32) * 0.1
        W2 = jax.random.normal(k5, (hidden_dim, hidden_dim), jnp.float32) * 0.1
        b2 = jax.random.normal(k6, (1, hidden_dim), jnp.float32) * 0.1
        gamma = jnp.ones((1, hidden_dim), jnp.float32)   # BatchNorm1d defaults
        beta = jnp.zeros((1, hidden_dim), jnp.float32)
        params.append((We, be, W1, b1, W2, b2, gamma, beta))
    return params


def gconv_forward(x, edge_index, edge_attr, batch, params, num_graphs):
    N, node_dim = x.shape
    E = edge_index.shape[1]
    edge_dim = edge_attr.shape[1]
    hidden = params[0][2].shape[1]            # W1: (din, hidden)

    H_pad = _round_up(hidden, LANE)
    ED_pad = _round_up(edge_dim, LANE)
    Din0_pad = _round_up(node_dim, LANE)

    e_tile, vmem_limit = _choose_tile_and_vmem(
        E, N, num_graphs, ED_pad, max(Din0_pad, H_pad), H_pad)
    E_pad = _round_up(max(E, 1), e_tile)

    src_pad = _pad_to(edge_index[0].astype(jnp.int32), (E_pad,))
    dst_pad = _pad_to(edge_index[1].astype(jnp.int32), (E_pad,))

    # pool operator P[b, n] = 1 iff batch[n] == b  (built directly, no transpose)
    P = jax.nn.one_hot(batch, num_graphs, axis=0, dtype=jnp.float32)   # [B, N]

    ea_pad = _pad_to(edge_attr.astype(jnp.float32),
                     (E_pad, ED_pad)).astype(COMPUTE_DTYPE)

    zs, gs = [], []
    z_pad = None
    for i, layer_params in enumerate(params):
        din = node_dim if i == 0 else hidden
        Din_pad = _round_up(din, LANE)
        if i == 0:
            x_in = _pad_to(x.astype(jnp.float32), (N, Din_pad))
        else:
            x_in = z_pad          # [N, H_pad]; padded columns are exactly 0
        pparams = _pad_layer_params(layer_params, ED_pad, Din_pad, H_pad)
        z_pad, g_pad = gine_layer(x_in, ea_pad, src_pad, dst_pad, P, pparams,
                                  n_edges=E, e_tile=e_tile,
                                  vmem_limit=vmem_limit)
        zs.append(z_pad[:, :hidden])
        gs.append(g_pad[:, :hidden])

    z_out = jnp.concatenate(zs, axis=1)
    g_out = jnp.concatenate(gs, axis=1)
    return z_out, g_out


# ---------------------------------------------------------------------------
# Pure-JAX reference (for correctness check only)
# ---------------------------------------------------------------------------
def _reference_forward(x, edge_index, edge_attr, batch, params, num_graphs):
    src, dst = edge_index[0], edge_index[1]
    z = x
    zs, gs = [], []
    for (We, be, W1, b1, W2, b2, gamma, beta) in params:
        lin = edge_attr @ We + be
        msg = jax.nn.relu(z[src] + lin)
        aggr = jax.ops.segment_sum(msg, dst, num_segments=z.shape[0])
        h = (1.0 + GINE_EPS) * z + aggr
        h = jax.nn.relu(h @ W1 + b1)
        h = h @ W2 + b2
        h = jax.nn.relu(h)
        mean = h.mean(axis=0, keepdims=True)
        var = ((h - mean) ** 2).mean(axis=0, keepdims=True)
        z = (h - mean) * (gamma / jnp.sqrt(var + BN_EPS)) + beta
        zs.append(z)
        gs.append(jax.ops.segment_sum(z, batch, num_segments=num_graphs))
    return jnp.concatenate(zs, axis=1), jnp.concatenate(gs, axis=1)


if __name__ == "__main__":
    # small shapes: 16 nodes, 32 edges, node_dim=8, edge_dim=8, hidden=32,
    # 2 layers, 2 graphs
    N, E = 16, 32
    node_dim, edge_dim, hidden_dim, num_layers, num_graphs = 8, 8, 32, 2, 2

    key = jax.random.PRNGKey(0)
    key, kx, ke, ks, kd = jax.random.split(key, 5)
    x = jax.random.normal(kx, (N, node_dim), jnp.float32)
    edge_attr = jax.random.normal(ke, (E, edge_dim), jnp.float32)
    src = jax.random.randint(ks, (E,), 0, N, jnp.int32)
    dst = jax.random.randint(kd, (E,), 0, N, jnp.int32)
    edge_index = jnp.stack([src, dst], axis=0)                    # [2, E]
    batch = jnp.concatenate([jnp.zeros(N // 2, jnp.int32),
                             jnp.ones(N - N // 2, jnp.int32)])    # [N]

    params = init_gconv_params(key, node_dim, edge_dim, hidden_dim, num_layers)

    fwd = jax.jit(gconv_forward, static_argnums=(5,))
    z_out, g_out = fwd(x, edge_index, edge_attr, batch, params, num_graphs)
    jax.block_until_ready((z_out, g_out))

    assert z_out.shape == (N, hidden_dim * num_layers)
    assert g_out.shape == (num_graphs, hidden_dim * num_layers)
    assert bool(jnp.all(jnp.isfinite(z_out))) and bool(jnp.all(jnp.isfinite(g_out)))

    z_ref, g_ref = _reference_forward(x, edge_index, edge_attr, batch,
                                      params, num_graphs)
    tol = 1e-4 if COMPUTE_DTYPE == jnp.float32 else 2e-1   # bf16 MXU path on TPU
    assert bool(jnp.allclose(z_out, z_ref, rtol=tol, atol=tol)), "z mismatch"
    assert bool(jnp.allclose(g_out, g_ref, rtol=tol, atol=tol)), "g mismatch"

    print("KERNEL_OK")
</pallas_src>

<mosaic_0001>
module attributes {stable_mosaic.version = 11 : i64} {
  func.func @_gine_layer_kernel(%arg0: i32, %arg1: memref<32xi32, #tpu.memory_space<smem>>, %arg2: memref<32xi32, #tpu.memory_space<smem>>, %arg3: memref<16x128xf32, #tpu.memory_space<vmem>>, %arg4: memref<32x128xf32, #tpu.memory_space<vmem>>, %arg5: memref<2x16xf32, #tpu.memory_space<vmem>>, %arg6: memref<128x128xf32, #tpu.memory_space<vmem>>, %arg7: memref<1x128xf32, #tpu.memory_space<vmem>>, %arg8: memref<128x128xf32, #tpu.memory_space<vmem>>, %arg9: memref<1x128xf32, #tpu.memory_space<vmem>>, %arg10: memref<128x128xf32, #tpu.memory_space<vmem>>, %arg11: memref<1x128xf32, #tpu.memory_space<vmem>>, %arg12: memref<1x128xf32, #tpu.memory_space<vmem>>, %arg13: memref<1x128xf32, #tpu.memory_space<vmem>>, %arg14: memref<16x128xf32, #tpu.memory_space<vmem>>, %arg15: memref<2x128xf32, #tpu.memory_space<vmem>>, %arg16: memref<16x128xf32, #tpu.memory_space<vmem>>, %arg17: memref<32x128xf32, #tpu.memory_space<vmem>>) attributes {dimension_semantics = [#tpu.dimension_semantics<arbitrary>], iteration_bounds = array<i64: 1>, scalar_prefetch = 2 : i64, scratch_operands = 2 : i64, tpu.core_type = #tpu.core_type<tc>, window_params = [{pipeline_mode = #tpu.pipeline_mode<synchronous>, transform_indices = @transform_0, window_bounds = array<i64: 16, 128>}, {transform_indices = @transform_1, window_bounds = array<i64: 32, 128>}, {pipeline_mode = #tpu.pipeline_mode<synchronous>, transform_indices = @transform_2, window_bounds = array<i64: 2, 16>}, {pipeline_mode = #tpu.pipeline_mode<synchronous>, transform_indices = @transform_3, window_bounds = array<i64: 128, 128>}, {pipeline_mode = #tpu.pipeline_mode<synchronous>, transform_indices = @transform_4, window_bounds = array<i64: 1, 128>}, {pipeline_mode = #tpu.pipeline_mode<synchronous>, transform_indices = @transform_5, window_bounds = array<i64: 128, 128>}, {pipeline_mode = #tpu.pipeline_mode<synchronous>, transform_indices = @transform_6, window_bounds = array<i64: 1, 128>}, {pipeline_mode = #tpu.pipeline_mode<synchronous>, transform_indices = @transform_7, window_bounds = array<i64: 128, 128>}, {pipeline_mode = #tpu.pipeline_mode<synchronous>, transform_indices = @transform_8, window_bounds = array<i64: 1, 128>}, {pipeline_mode = #tpu.pipeline_mode<synchronous>, transform_indices = @transform_9, window_bounds = array<i64: 1, 128>}, {pipeline_mode = #tpu.pipeline_mode<synchronous>, transform_indices = @transform_10, window_bounds = array<i64: 1, 128>}, {pipeline_mode = #tpu.pipeline_mode<synchronous>, transform_indices = @transform_11, window_bounds = array<i64: 16, 128>}, {pipeline_mode = #tpu.pipeline_mode<synchronous>, transform_indices = @transform_12, window_bounds = array<i64: 2, 128>}]} {
    %c0_i32 = arith.constant 0 : i32
    %0 = arith.cmpi eq, %arg0, %c0_i32 : i32
    %1 = arith.extui %0 : i1 to i32
    %c0_i32_0 = arith.constant 0 : i32
    %2 = arith.cmpi ne, %1, %c0_i32_0 : i32
    scf.if %2 {
      %cst_15 = arith.constant 0.000000e+00 : f32
      %19 = vector.broadcast %cst_15 : f32 to vector<16x128xf32>
      %c0_16 = arith.constant 0 : index
      %c0_17 = arith.constant 0 : index
      %20 = vector.load %arg16[%c0_16, %c0_17] : memref<16x128xf32, #tpu.memory_space<vmem>>, vector<16x128xf32>
      tpu.vector_store %arg16[%c0_16, %c0_17], %19 {strides = array<i32>} : memref<16x128xf32, #tpu.memory_space<vmem>>, vector<16x128xf32>,
    } else {
    }
    %c0 = arith.constant 0 : index
    %c0_1 = arith.constant 0 : index
    %3 = vector.load %arg4[%c0, %c0_1] : memref<32x128xf32, #tpu.memory_space<vmem>>, vector<32x128xf32>
    %c0_2 = arith.constant 0 : index
    %c0_3 = arith.constant 0 : index
    %4 = vector.load %arg6[%c0_2, %c0_3] : memref<128x128xf32, #tpu.memory_space<vmem>>, vector<128x128xf32>
    %cst = arith.constant dense<0.000000e+00> : vector<32x128xf32>
    %5 = tpu.matmul %3, %4, %cst {dimension_numbers = #tpu.dot_dimension_numbers<[1], [0], [0], [1], [0, 0, 1, 1], [], []>} : vector<32x128xf32>, vector<128x128xf32>, vector<32x128xf32> -> vector<32x128xf32>
    %c0_4 = arith.constant 0 : index
    %c0_5 = arith.constant 0 : index
    %6 = vector.load %arg7[%c0_4, %c0_5] : memref<1x128xf32, #tpu.memory_space<vmem>>, vector<1x128xf32>
    %7 = vector.broadcast %6 : vector<1x128xf32> to vector<32x128xf32>
    %8 = arith.addf %5, %7 : vector<32x128xf32>
    %c0_6 = arith.constant 0 : index
    %c0_7 = arith.constant 0 : index
    %9 = vector.load %arg17[%c0_6, %c0_7] : memref<32x128xf32, #tpu.memory_space<vmem>>, vector<32x128xf32>
    tpu.vector_store %arg17[%c0_6, %c0_7], %8 {strides = array<i32>} : memref<32x128xf32, #tpu.memory_space<vmem>>, vector<32x128xf32>,
    %c32_i32 = arith.constant 32 : i32
    %10 = arith.muli %arg0, %c32_i32 : i32
    %c32_i32_8 = arith.constant 32 : i32
    %11 = arith.subi %c32_i32_8, %10 : i32
    %c32_i32_9 = arith.constant 32 : i32
    %12 = arith.minsi %c32_i32_9, %11 : i32
    %c0_i32_10 = arith.constant 0 : i32
    %13 = arith.maxsi %12, %c0_i32_10 : i32
    %c0_i32_11 = arith.constant 0 : i32
    %c0_i32_12 = arith.constant 0 : i32
    %14 = arith.subi %13, %c0_i32_12 : i32
    %15 = arith.addi %c0_i32_12, %14 : i32
    %c1_i32 = arith.constant 1 : i32
    scf.for %arg18 = %c0_i32_12 to %15 step %c1_i32  : i32 {
      %19 = arith.addi %10, %arg18 : i32
      %20 = arith.index_cast %19 : i32 to index
      %21 = memref.load %arg1[%20] : memref<32xi32, #tpu.memory_space<smem>>
      %22 = arith.addi %10, %arg18 : i32
      %23 = arith.index_cast %22 : i32 to index
      %24 = memref.load %arg2[%23] : memref<32xi32, #tpu.memory_space<smem>>
      %25 = arith.index_cast %21 : i32 to index
      %c0_15 = arith.constant 0 : index
      %26 = vector.load %arg3[%25, %c0_15] : memref<16x128xf32, #tpu.memory_space<vmem>>, vector<1x128xf32>
      %27 = arith.index_cast %arg18 : i32 to index
      %c0_16 = arith.constant 0 : index
      %28 = vector.load %arg17[%27, %c0_16] : memref<32x128xf32, #tpu.memory_space<vmem>>, vector<1x128xf32>
      %29 = arith.addf %26, %28 : vector<1x128xf32>
      %cst_17 = arith.constant 0.000000e+00 : f32
      %30 = vector.broadcast %cst_17 : f32 to vector<1x128xf32>
      %31 = arith.maximumf %29, %30 : vector<1x128xf32>
      %32 = arith.index_cast %24 : i32 to index
      %c0_18 = arith.constant 0 : index
      %33 = vector.load %arg16[%32, %c0_18] : memref<16x128xf32, #tpu.memory_space<vmem>>, vector<1x128xf32>
      %34 = arith.addf %33, %31 : vector<1x128xf32>
      %35 = arith.index_cast %24 : i32 to index
      %c0_19 = arith.constant 0 : index
      %36 = vector.load %arg16[%35, %c0_19] : memref<16x128xf32, #tpu.memory_space<vmem>>, vector<1x128xf32>
      tpu.vector_store %arg16[%35, %c0_19], %34 {strides = array<i32>} : memref<16x128xf32, #tpu.memory_space<vmem>>, vector<1x128xf32>,
    }
    %c0_i32_13 = arith.constant 0 : i32
    %16 = arith.cmpi eq, %arg0, %c0_i32_13 : i32
    %17 = arith.extui %16 : i1 to i32
    %c0_i32_14 = arith.constant 0 : i32
    %18 = arith.cmpi ne, %17, %c0_i32_14 : i32
    scf.if %18 {
      %c0_15 = arith.constant 0 : index
      %c0_16 = arith.constant 0 : index
      %19 = vector.load %arg3[%c0_15, %c0_16] : memref<16x128xf32, #tpu.memory_space<vmem>>, vector<16x128xf32>
      %cst_17 = arith.constant 1.000000e+00 : f32
      %20 = vector.broadcast %cst_17 : f32 to vector<16x128xf32>
      %21 = arith.mulf %20, %19 : vector<16x128xf32>
      %c0_18 = arith.constant 0 : index
      %c0_19 = arith.constant 0 : index
      %22 = vector.load %arg16[%c0_18, %c0_19] : memref<16x128xf32, #tpu.memory_space<vmem>>, vector<16x128xf32>
      %23 = arith.addf %21, %22 : vector<16x128xf32>
      %c0_20 = arith.constant 0 : index
      %c0_21 = arith.constant 0 : index
      %24 = vector.load %arg8[%c0_20, %c0_21] : memref<128x128xf32, #tpu.memory_space<vmem>>, vector<128x128xf32>
      %cst_22 = arith.constant dense<0.000000e+00> : vector<16x128xf32>
      %25 = tpu.matmul %23, %24, %cst_22 {dimension_numbers = #tpu.dot_dimension_numbers<[1], [0], [0], [1], [0, 0, 1, 1], [], []>} : vector<16x128xf32>, vector<128x128xf32>, vector<16x128xf32> -> vector<16x128xf32>
      %c0_23 = arith.constant 0 : index
      %c0_24 = arith.constant 0 : index
      %26 = vector.load %arg9[%c0_23, %c0_24] : memref<1x128xf32, #tpu.memory_space<vmem>>, vector<1x128xf32>
      %27 = vector.broadcast %26 : vector<1x128xf32> to vector<16x128xf32>
      %28 = arith.addf %25, %27 : vector<16x128xf32>
      %cst_25 = arith.constant 0.000000e+00 : f32
      %29 = vector.broadcast %cst_25 : f32 to vector<16x128xf32>
      %30 = arith.maximumf %28, %29 : vector<16x128xf32>
      %c0_26 = arith.constant 0 : index
      %c0_27 = arith.constant 0 : index
      %31 = vector.load %arg10[%c0_26, %c0_27] : memref<128x128xf32, #tpu.memory_space<vmem>>, vector<128x128xf32>
      %cst_28 = arith.constant dense<0.000000e+00> : vector<16x128xf32>
      %32 = tpu.matmul %30, %31, %cst_28 {dimension_numbers = #tpu.dot_dimension_numbers<[1], [0], [0], [1], [0, 0, 1, 1], [], []>} : vector<16x128xf32>, vector<128x128xf32>, vector<16x128xf32> -> vector<16x128xf32>
      %c0_29 = arith.constant 0 : index
      %c0_30 = arith.constant 0 : index
      %33 = vector.load %arg11[%c0_29, %c0_30] : memref<1x128xf32, #tpu.memory_space<vmem>>, vector<1x128xf32>
      %34 = vector.broadcast %33 : vector<1x128xf32> to vector<16x128xf32>
      %35 = arith.addf %32, %34 : vector<16x128xf32>
      %cst_31 = arith.constant 0.000000e+00 : f32
      %36 = vector.broadcast %cst_31 : f32 to vector<16x128xf32>
      %37 = arith.maximumf %35, %36 : vector<16x128xf32>
      %cst_32 = arith.constant dense<0.000000e+00> : vector<128xf32>
      %38 = vector.multi_reduction <add>, %37, %cst_32 [0] : vector<16x128xf32> to vector<128xf32>
      %39 = vector.shape_cast %38 : vector<128xf32> to vector<1x128xf32>
      %cst_33 = arith.constant 6.250000e-02 : f32
      %40 = vector.broadcast %cst_33 : f32 to vector<1x128xf32>
      %41 = arith.mulf %39, %40 : vector<1x128xf32>
      %42 = vector.broadcast %41 : vector<1x128xf32> to vector<16x128xf32>
      %43 = arith.subf %37, %42 : vector<16x128xf32>
      %44 = arith.mulf %43, %43 : vector<16x128xf32>
      %cst_34 = arith.constant dense<0.000000e+00> : vector<128xf32>
      %45 = vector.multi_reduction <add>, %44, %cst_34 [0] : vector<16x128xf32> to vector<128xf32>
      %46 = vector.shape_cast %45 : vector<128xf32> to vector<1x128xf32>
      %cst_35 = arith.constant 6.250000e-02 : f32
      %47 = vector.broadcast %cst_35 : f32 to vector<1x128xf32>
      %48 = arith.mulf %46, %47 : vector<1x128xf32>
      %c0_36 = arith.constant 0 : index
      %c0_37 = arith.constant 0 : index
      %49 = vector.load %arg12[%c0_36, %c0_37] : memref<1x128xf32, #tpu.memory_space<vmem>>, vector<1x128xf32>
      %cst_38 = arith.constant 9.99999974E-6 : f32
      %50 = vector.broadcast %cst_38 : f32 to vector<1x128xf32>
      %51 = arith.addf %48, %50 : vector<1x128xf32>
      %52 = math.rsqrt %51 : vector<1x128xf32>
      %53 = arith.mulf %49, %52 : vector<1x128xf32>
      %54 = vector.broadcast %53 : vector<1x128xf32> to vector<16x128xf32>
      %55 = arith.mulf %43, %54 : vector<16x128xf32>
      %c0_39 = arith.constant 0 : index
      %c0_40 = arith.constant 0 : index
      %56 = vector.load %arg13[%c0_39, %c0_40] : memref<1x128xf32, #tpu.memory_space<vmem>>, vector<1x128xf32>
      %57 = vector.broadcast %56 : vector<1x128xf32> to vector<16x128xf32>
      %58 = arith.addf %55, %57 : vector<16x128xf32>
      %c0_41 = arith.constant 0 : index
      %c0_42 = arith.constant 0 : index
      %59 = vector.load %arg14[%c0_41, %c0_42] : memref<16x128xf32, #tpu.memory_space<vmem>>, vector<16x128xf32>
      tpu.vector_store %arg14[%c0_41, %c0_42], %58 {strides = array<i32>} : memref<16x128xf32, #tpu.memory_space<vmem>>, vector<16x128xf32>,
      %c0_43 = arith.constant 0 : index
      %c0_44 = arith.constant 0 : index
      %60 = vector.load %arg5[%c0_43, %c0_44] : memref<2x16xf32, #tpu.memory_space<vmem>>, vector<2x16xf32>
      %cst_45 = arith.constant dense<0.000000e+00> : vector<2x128xf32>
      %61 = tpu.matmul %60, %58, %cst_45 {dimension_numbers = #tpu.dot_dimension_numbers<[1], [0], [0], [1], [0, 0, 1, 1], [], []>} : vector<2x16xf32>, vector<16x128xf32>, vector<2x128xf32> -> vector<2x128xf32>
      %c0_46 = arith.constant 0 : index
      %c0_47 = arith.constant 0 : index
      %62 = vector.load %arg15[%c0_46, %c0_47] : memref<2x128xf32, #tpu.memory_space<vmem>>, vector<2x128xf32>
      tpu.vector_store %arg15[%c0_46, %c0_47], %61 {strides = array<i32>} : memref<2x128xf32, #tpu.memory_space<vmem>>, vector<2x128xf32>,
    } else {
    }
    return
  }
  func.func @transform_0(%arg0: i32, %arg1: memref<32xi32, #tpu.memory_space<smem>>, %arg2: memref<32xi32, #tpu.memory_space<smem>>) -> (i32, i32) {
    %c0_i32 = arith.constant 0 : i32
    %c0_i32_0 = arith.constant 0 : i32
    %c0_i32_1 = arith.constant 0 : i32
    return %c0_i32, %c0_i32_0 : i32, i32
  }
  func.func @transform_1(%arg0: i32, %arg1: memref<32xi32, #tpu.memory_space<smem>>, %arg2: memref<32xi32, #tpu.memory_space<smem>>) -> (i32, i32) {
    %c0_i32 = arith.constant 0 : i32
    %c0_i32_0 = arith.constant 0 : i32
    return %arg0, %c0_i32 : i32, i32
  }
  func.func @transform_2(%arg0: i32, %arg1: memref<32xi32, #tpu.memory_space<smem>>, %arg2: memref<32xi32, #tpu.memory_space<smem>>) -> (i32, i32) {
    %c0_i32 = arith.constant 0 : i32
    %c0_i32_0 = arith.constant 0 : i32
    %c0_i32_1 = arith.constant 0 : i32
    return %c0_i32, %c0_i32_0 : i32, i32
  }
  func.func @transform_3(%arg0: i32, %arg1: memref<32xi32, #tpu.memory_space<smem>>, %arg2: memref<32xi32, #tpu.memory_space<smem>>) -> (i32, i32) {
    %c0_i32 = arith.constant 0 : i32
    %c0_i32_0 = arith.constant 0 : i32
    %c0_i32_1 = arith.constant 0 : i32
    return %c0_i32, %c0_i32_0 : i32, i32
  }
  func.func @transform_4(%arg0: i32, %arg1: memref<32xi32, #tpu.memory_space<smem>>, %arg2: memref<32xi32, #tpu.memory_space<smem>>) -> (i32, i32) {
    %c0_i32 = arith.constant 0 : i32
    %c0_i32_0 = arith.constant 0 : i32
    %c0_i32_1 = arith.constant 0 : i32
    return %c0_i32, %c0_i32_0 : i32, i32
  }
  func.func @transform_5(%arg0: i32, %arg1: memref<32xi32, #tpu.memory_space<smem>>, %arg2: memref<32xi32, #tpu.memory_space<smem>>) -> (i32, i32) {
    %c0_i32 = arith.constant 0 : i32
    %c0_i32_0 = arith.constant 0 : i32
    %c0_i32_1 = arith.constant 0 : i32
    return %c0_i32, %c0_i32_0 : i32, i32
  }
  func.func @transform_6(%arg0: i32, %arg1: memref<32xi32, #tpu.memory_space<smem>>, %arg2: memref<32xi32, #tpu.memory_space<smem>>) -> (i32, i32) {
    %c0_i32 = arith.constant 0 : i32
    %c0_i32_0 = arith.constant 0 : i32
    %c0_i32_1 = arith.constant 0 : i32
    return %c0_i32, %c0_i32_0 : i32, i32
  }
  func.func @transform_7(%arg0: i32, %arg1: memref<32xi32, #tpu.memory_space<smem>>, %arg2: memref<32xi32, #tpu.memory_space<smem>>) -> (i32, i32) {
    %c0_i32 = arith.constant 0 : i32
    %c0_i32_0 = arith.constant 0 : i32
    %c0_i32_1 = arith.constant 0 : i32
    return %c0_i32, %c0_i32_0 : i32, i32
  }
  func.func @transform_8(%arg0: i32, %arg1: memref<32xi32, #tpu.memory_space<smem>>, %arg2: memref<32xi32, #tpu.memory_space<smem>>) -> (i32, i32) {
    %c0_i32 = arith.constant 0 : i32
    %c0_i32_0 = arith.constant 0 : i32
    %c0_i32_1 = arith.constant 0 : i32
    return %c0_i32, %c0_i32_0 : i32, i32
  }
  func.func @transform_9(%arg0: i32, %arg1: memref<32xi32, #tpu.memory_space<smem>>, %arg2: memref<32xi32, #tpu.memory_space<smem>>) -> (i32, i32) {
    %c0_i32 = arith.constant 0 : i32
    %c0_i32_0 = arith.constant 0 : i32
    %c0_i32_1 = arith.constant 0 : i32
    return %c0_i32, %c0_i32_0 : i32, i32
  }
  func.func @transform_10(%arg0: i32, %arg1: memref<32xi32, #tpu.memory_space<smem>>, %arg2: memref<32xi32, #tpu.memory_space<smem>>) -> (i32, i32) {
    %c0_i32 = arith.constant 0 : i32
    %c0_i32_0 = arith.constant 0 : i32
    %c0_i32_1 = arith.constant 0 : i32
    return %c0_i32, %c0_i32_0 : i32, i32
  }
  func.func @transform_11(%arg0: i32, %arg1: memref<32xi32, #tpu.memory_space<smem>>, %arg2: memref<32xi32, #tpu.memory_space<smem>>) -> (i32, i32) {
    %c0_i32 = arith.constant 0 : i32
    %c0_i32_0 = arith.constant 0 : i32
    %c0_i32_1 = arith.constant 0 : i32
    return %c0_i32, %c0_i32_0 : i32, i32
  }
  func.func @transform_12(%arg0: i32, %arg1: memref<32xi32, #tpu.memory_space<smem>>, %arg2: memref<32xi32, #tpu.memory_space<smem>>) -> (i32, i32) {
    %c0_i32 = arith.constant 0 : i32
    %c0_i32_0 = arith.constant 0 : i32
    %c0_i32_1 = arith.constant 0 : i32
    return %c0_i32, %c0_i32_0 : i32, i32
  }
}

</mosaic_0001>

<bundles_post_ra>
// kernel: gconv_forward.2
= control target key start
LH: loop header
LB: loop body
LE: loop exit
PB: predicated region body
PF: predicated region fallthrough
CT: control target
= control target key end

     0   :  { %s398_s19 = smov [#allocation5]   ;;  %s399_s20 = smov [#allocation6]   ;;  %s674_s0 = inlined_call_operand.vmem [shape: s32[32], index: 0, kind: input, shape index: {}]   ;;  %s675_s2 = inlined_call_operand.vmem [shape: f32[16,128], index: 2, kind: input, shape index: {}]   ;;  %s676_s3 = inlined_call_operand.vmem [shape: f32[32,128], index: 3, kind: input, shape index: {}]   ;;  %s677_s4 = inlined_call_operand.vmem [shape: f32[2,16], index: 4, kind: input, shape index: {}]   ;;  %s678_s5 = inlined_call_operand.vmem [shape: f32[128,128], index: 5, kind: input, shape index: {}]   ;;  %s679_s6 = inlined_call_operand.vmem [shape: f32[1,128], index: 6, kind: input, shape index: {}]   ;;  %s680_s7 = inlined_call_operand.vmem [shape: f32[128,128], index: 7, kind: input, shape index: {}]   ;;  %s681_s8 = inlined_call_operand.vmem [shape: f32[1,128], index: 8, kind: input, shape index: {}]   ;;  %s682_s9 = inlined_call_operand.vmem [shape: f32[128,128], index: 9, kind: input, shape index: {}]   ;;  %s683_s10 = inlined_call_operand.vmem [shape: f32[1,128], index: 10, kind: input, shape index: {}]   ;;  %s684_s11 = inlined_call_operand.vmem [shape: f32[1,128], index: 11, kind: input, shape index: {}]   ;;  %s685_s12 = inlined_call_operand.vmem [shape: f32[1,128], index: 12, kind: input, shape index: {}]   ;;  %s686_s13 = inlined_call_operand.vmem [shape: f32[16,128], index: 13, kind: output, shape index: {0}]   ;;  %s687_s14 = inlined_call_operand.vmem [shape: f32[2,128], index: 14, kind: output, shape index: {1}]   ;;  %s688_s1 = inlined_call_operand.vmem [shape: s32[32], index: 1, kind: input, shape index: {}]  }
   0x1   :  { %s21_s15 = sshll.u32 %s674_s0, 4  ;;  %s26_s18 = sshll.u32 %s688_s1, 4  ;;  %s22_s15 = int_to_ptr.vmem [resolvable:$true] %s21_s15  ;;  %s27_s18 = int_to_ptr.vmem [resolvable:$true] %s26_s18 }
   0x2   :  { %24 = dma.vmem_to_smem %s22_s15, 16, %s398_s19, [#allocation4] }
   0x3   :  { %29 = dma.vmem_to_smem %s27_s18, 16, %s399_s20, [#allocation4] }
   0x4   :  { %392 = dma.done.wait [#allocation4], 32 }
   0x5   :  { %393 = vsyncadd [#allocation4], 4294967264 }
   0x6   :  { %32 = sfence }
   0x7   :  { %v80_v0 = vld [vmem:[%s678_s5 + $0x78] sm:$0xff]  ;;  %v79_v1 = vld [vmem:[%s678_s5 + $0x70] sm:$0xff]  ;;  %v400_v2 = vmov 0.0   ;;  %v78_v3 = vld [vmem:[%s678_s5 + $0x68] sm:$0xff]  ;;  %s394_s1 = smov 0  }
   0x8   :  { %59 = vst [vmem:[#allocation2] sm:$0xff] %v400_v2  ;;  %85 = vmatpush.msra.mxu0 %v80_v0  ;;  %331 = vmatpush.msra.mxu3 %v80_v0  ;;  %v77_v4 = vld [vmem:[%s678_s5 + $0x60] sm:$0xff]  ;;  %v76_v5 = vld [vmem:[%s678_s5 + $0x58] sm:$0xff]  ;;  %v75_v6 = vld [vmem:[%s678_s5 + $0x50] sm:$0xff] }
   0x9   :  { %60 = vst [vmem:[#allocation2 + $0x8] sm:$0xff] %v400_v2  ;;  %v74_v7 = vld [vmem:[%s678_s5 + $0x48] sm:$0xff]  ;;  %v73_v8 = vld [vmem:[%s678_s5 + $0x40] sm:$0xff]  ;;  %v72_v9 = vld [vmem:[%s678_s5 + $0x38] sm:$0xff] }
   0xa   :  { %86 = vmatpush.msra.mxu0 %v79_v1  ;;  %332 = vmatpush.msra.mxu3 %v79_v1  ;;  %v71_v10 = vld [vmem:[%s678_s5 + $0x30] sm:$0xff]  ;;  %v70_v11 = vld [vmem:[%s678_s5 + $0x28] sm:$0xff]  ;;  %v69_v12 = vld [vmem:[%s678_s5 + $0x20] sm:$0xff] }
   0xb   :  { %v68_v13 = vld [vmem:[%s678_s5 + $0x18] sm:$0xff]  ;;  %v67_v14 = vld [vmem:[%s678_s5 + $0x10] sm:$0xff]  ;;  %v66_v15 = vld [vmem:[%s678_s5 + $0x8] sm:$0xff] }
   0xc   :  { %87 = vmatpush.msra.mxu0 %v78_v3  ;;  %333 = vmatpush.msra.mxu3 %v78_v3  ;;  %v65_v16 = vld [vmem:[%s678_s5] sm:$0xff]  ;;  %v64_v18 = vld [vmem:[%s676_s3 + $0x18] sm:$0xff]  ;;  %v62_v19 = vld [vmem:[%s676_s3 + $0x8] sm:$0xff] }
   0xd   :  { %v61_v17 = vld [vmem:[%s676_s3] sm:$0xff]  ;;  %v63_v20 = vld [vmem:[%s676_s3 + $0x10] sm:$0xff] }
   0xe   :  { %88 = vmatpush.msra.mxu0 %v77_v4  ;;  %334 = vmatpush.msra.mxu3 %v77_v4  ;;  %v358_v21 = vld [vmem:[%s679_s6] ss:$0 sm:$0xff] }
  0x10   :  { %89 = vmatpush.msra.mxu0 %v76_v5  ;;  %335 = vmatpush.msra.mxu3 %v76_v5 }
  0x12   :  { %90 = vmatpush.msra.mxu0 %v75_v6  ;;  %336 = vmatpush.msra.mxu3 %v75_v6 }
  0x14   :  { %91 = vmatpush.msra.mxu0 %v74_v7  ;;  %337 = vmatpush.msra.mxu3 %v74_v7 }
  0x16   :  { %92 = vmatpush.msra.mxu0 %v73_v8  ;;  %338 = vmatpush.msra.mxu3 %v73_v8 }
  0x18   :  { %93 = vmatpush.msra.mxu0 %v72_v9  ;;  %339 = vmatpush.msra.mxu3 %v72_v9 }
  0x1a   :  { %94 = vmatpush.msra.mxu0 %v71_v10  ;;  %340 = vmatpush.msra.mxu3 %v71_v10 }
  0x1c   :  { %95 = vmatpush.msra.mxu0 %v70_v11  ;;  %341 = vmatpush.msra.mxu3 %v70_v11 }
  0x1e   :  { %96 = vmatpush.msra.mxu0 %v69_v12  ;;  %342 = vmatpush.msra.mxu3 %v69_v12 }
  0x20   :  { %97 = vmatpush.msra.mxu0 %v68_v13  ;;  %343 = vmatpush.msra.mxu3 %v68_v13 }
  0x22   :  { %98 = vmatpush.msra.mxu0 %v67_v14  ;;  %344 = vmatpush.msra.mxu3 %v67_v14 }
  0x24   :  { %99 = vmatpush.msra.mxu0 %v66_v15  ;;  %345 = vmatpush.msra.mxu3 %v66_v15 }
  0x26   :  { %100 = vmatpush.msra.mxu0 %v65_v16  ;;  %346 = vmatpush.msra.mxu3 %v65_v16 }
  0x27   :  { %101 = vmatmul.f32.vlgmr.msra.gmra.mxu0 %v61_v17  ;;  %110 = vmatmul.f32.vlgmr.msra.gmra.mxu3 %v64_v18 }
  0x2f   :  { %104 = vmatmul.f32.gmra.mxu0 %v62_v19 }
  0x37   :  { %107 = vmatmul.f32.gmra.mxu0 %v63_v20 }
  0xa4   :  { %v102_v22 = vpop.f32.mrf.mxu0 }
  0xa5   :  { %v103_v23 = vadd.f32 %v358_v21, %v102_v22 }
  0xa7   :  { %114 = vst [vmem:[#allocation3] sm:$0xff] %v103_v23 }
  0xaa   :  { %v111_v24 = vpop.f32.mrf.mxu3 }
  0xab   :  { %v112_v25 = vadd.f32 %v358_v21, %v111_v24 }
  0xac   :  { %v105_v26 = vpop.f32.mrf.mxu0 }
  0xad   :  { %v106_v27 = vadd.f32 %v358_v21, %v105_v26  ;;  %117 = vst [vmem:[#allocation3 + $0x18] sm:$0xff] %v112_v25 }
  0xaf   :  { %115 = vst [vmem:[#allocation3 + $0x8] sm:$0xff] %v106_v27 }
  0xb4   :  { %v108_v28 = vpop.f32.mrf.mxu0 }
  0xb5   :  { %v109_v29 = vadd.f32 %v358_v21, %v108_v28 }
  0xb7   :  { %116 = vst [vmem:[#allocation3 + $0x10] sm:$0xff] %v109_v29 }
  0xb8 LB: > { %s131_s3 = sld [smem:[#allocation5 + %s396_s1]]  ;;  %s135_s26 = scalar_lea.vmem [#allocation3], %s396_s1  ;;  %s396_s1 = sphi %s394_s1, %s127_s1  }
  0xb9   : > { %s132_s25 = sld [smem:[#allocation6 + %s396_s1]]  ;;  %s127_s1 = sadd.s32 1, %s396_s1  }
  0xba   : > { %p126_p0 = scmp.ge.s32.totalorder %s127_s1, 32 }
  0xbb   :  { %v167_v36 = vld [vmem:[%s680_s7 + $0x78] sm:$0xff] (%p126_p0)  ;;  %v166_v37 = vld [vmem:[%s680_s7 + $0x70] sm:$0xff] (%p126_p0)  ;;  %v165_v38 = vld [vmem:[%s680_s7 + $0x68] sm:$0xff] (%p126_p0)  ;;  %vm289_vm3 = vcmask (%p126_p0), 130048  }
  0xbc   :  { %172 = vmatpush.msra.mxu1 (%p126_p0), %v167_v36  ;;  %v164_v39 = vld [vmem:[%s680_s7 + $0x60] sm:$0xff] (%p126_p0)  ;;  %v163_v40 = vld [vmem:[%s680_s7 + $0x58] sm:$0xff] (%p126_p0)  ;;  %v162_v41 = vld [vmem:[%s680_s7 + $0x50] sm:$0xff] (%p126_p0) }
  0xbd   :  { %v212_v42 = vld [vmem:[%s682_s9 + $0x78] sm:$0xff] (%p126_p0)  ;;  %v211_v43 = vld [vmem:[%s682_s9 + $0x70] sm:$0xff] (%p126_p0)  ;;  %v161_v44 = vld [vmem:[%s680_s7 + $0x48] sm:$0xff] (%p126_p0) }
  0xbe   : > { %v136_v30 = vld [vmem:[%s135_s26] sm:$0x1]  ;;  %s133_s28 = scalar_lea.vmem %s675_s2, %s131_s3  ;;  %173 = vmatpush.msra.mxu1 (%p126_p0), %v166_v37  ;;  %217 = vmatpush.msra.mxu2 (%p126_p0), %v212_v42  ;;  %v210_v45 = vld [vmem:[%s682_s9 + $0x68] sm:$0xff] (%p126_p0)  ;;  %v159_v48 = vld [vmem:[%s680_s7 + $0x38] sm:$0xff] (%p126_p0) }
  0xbf   : > { %v134_v31 = vld [vmem:[%s133_s28] sm:$0x1]  ;;  %s139_s29 = scalar_lea.vmem [#allocation2], %s132_s25  ;;  %v208_v49 = vld [vmem:[%s682_s9 + $0x58] sm:$0xff] (%p126_p0)  ;;  %v158_v50 = vld [vmem:[%s680_s7 + $0x30] sm:$0xff] (%p126_p0) }
  0xc0   : > { %v137_v32 = vadd.f32 %v136_v30, %v134_v31  ;;  %v140_v33 = vld [vmem:[%s139_s29] sm:$0x1]  ;;  %174 = vmatpush.msra.mxu1 (%p126_p0), %v165_v38  ;;  %218 = vmatpush.msra.mxu2 (%p126_p0), %v211_v43  ;;  %v207_v51 = vld [vmem:[%s682_s9 + $0x50] sm:$0xff] (%p126_p0)  ;;  %v157_v52 = vld [vmem:[%s680_s7 + $0x28] sm:$0xff] (%p126_p0) }
  0xc1   :  { %v160_v46 = vld [vmem:[%s680_s7 + $0x40] sm:$0xff] (%p126_p0)  ;;  %v206_v53 = vld [vmem:[%s682_s9 + $0x48] sm:$0xff] (%p126_p0)  ;;  %v155_v56 = vld [vmem:[%s680_s7 + $0x18] sm:$0xff] (%p126_p0) }
  0xc2   : > { %v138_v34 = vmax.f32 %v137_v32, 0.0  ;;  %129 = sbr.rel (!%p126_p0) target bundleno = 184 (0xb8), region = 90  ;;  %175 = vmatpush.msra.mxu1 (%p126_p0), %v164_v39  ;;  %v209_v47 = vld [vmem:[%s682_s9 + $0x60] sm:$0xff] (%p126_p0)  ;;  %219 = vmatpush.msra.mxu2 (%p126_p0), %v210_v45  ;;  %v204_v57 = vld [vmem:[%s682_s9 + $0x38] sm:$0xff] (%p126_p0)  ;;  %v154_v58 = vld [vmem:[%s680_s7 + $0x10] sm:$0xff] (%p126_p0) }
  0xc3   :  { %v156_v54 = vld [vmem:[%s680_s7 + $0x20] sm:$0xff] (%p126_p0)  ;;  %v203_v59 = vld [vmem:[%s682_s9 + $0x30] sm:$0xff] (%p126_p0)  ;;  %v153_v62 = vld [vmem:[%s680_s7 + $0x8] sm:$0xff] (%p126_p0) }
  0xc4   : > { %v141_v35 = vadd.f32 %v140_v33, %v138_v34  ;;  %176 = vmatpush.msra.mxu1 (%p126_p0), %v163_v40  ;;  %220 = vmatpush.msra.mxu2 (%p126_p0), %v209_v47  ;;  %v205_v55 = vld [vmem:[%s682_s9 + $0x40] sm:$0xff] (%p126_p0)  ;;  %v202_v63 = vld [vmem:[%s682_s9 + $0x28] sm:$0xff] (%p126_p0)  ;;  %v200_v3 = vld [vmem:[%s682_s9 + $0x18] sm:$0xff] (%p126_p0) }
  0xc5   :  { %v146_v60 = vld [vmem:[%s675_s2] sm:$0xff] (%p126_p0)  ;;  %v147_v4 = vld [vmem:[%s675_s2 + $0x8] sm:$0xff] (%p126_p0)  ;;  %v199_v7 = vld [vmem:[%s682_s9 + $0x10] sm:$0xff] (%p126_p0) }
  0xc6   : > { %142 = vst [vmem:[%s139_s29] sm:$0x1] %v141_v35  ;;  %177 = vmatpush.msra.mxu1 (%p126_p0), %v162_v41  ;;  %221 = vmatpush.msra.mxu2 (%p126_p0), %v208_v49  ;;  %v152_v0 = vld [vmem:[%s680_s7] sm:$0xff] (%p126_p0)  ;;  %v198_v8 = vld [vmem:[%s682_s9 + $0x8] sm:$0xff] (%p126_p0) }
  0xc7   :  { %v201_v2 = vld [vmem:[%s682_s9 + $0x20] sm:$0xff] }
  0xc8   :  { %178 = vmatpush.msra.mxu1 %v161_v44  ;;  %222 = vmatpush.msra.mxu2 %v207_v51  ;;  %v197_v9 = vld [vmem:[%s682_s9] sm:$0xff] }
  0xc9   :  { %v359_v10 = vld [vmem:[%s681_s8] ss:$0 sm:$0xff] }
  0xca   :  { %179 = vmatpush.msra.mxu1 %v160_v46  ;;  %223 = vmatpush.msra.mxu2 %v206_v53  ;;  %v360_v18 = vld [vmem:[%s683_s10] ss:$0 sm:$0xff] }
  0xcc   :  { %180 = vmatpush.msra.mxu1 %v159_v48  ;;  %224 = vmatpush.msra.mxu2 %v205_v55  ;;  %v361_v55 = vld [vmem:[%s685_s12] ss:$0 sm:$0xff] }
  0xcd   :  { %v148_v61 = vld [vmem:[#allocation2] sm:$0xff]  ;;  %v149_v5 = vld [vmem:[#allocation2 + $0x8] sm:$0xff] }
  0xce   :  { %181 = vmatpush.msra.mxu1 %v158_v50  ;;  %225 = vmatpush.msra.mxu2 %v204_v57  ;;  %v150_v1 = vadd.f32 %v148_v61, %v146_v60  ;;  %v151_v6 = vadd.f32 %v149_v5, %v147_v4  ;;  %v262_v50 = vld [vmem:[%s684_s11] sm:$0x1] }
  0xcf   :  { %v288_v60 = vld [vmem:[%s677_s4] sm:$0x3] }
  0xd0   :  { %182 = vmatpush.msra.mxu1 %v157_v52  ;;  %226 = vmatpush.msra.mxu2 %v203_v59 }
  0xd2   :  { %183 = vmatpush.msra.mxu1 %v156_v54  ;;  %227 = vmatpush.msra.mxu2 %v202_v63 }
  0xd4   :  { %184 = vmatpush.msra.mxu1 %v155_v56  ;;  %228 = vmatpush.msra.mxu2 %v201_v2 }
  0xd6   :  { %185 = vmatpush.msra.mxu1 %v154_v58  ;;  %229 = vmatpush.msra.mxu2 %v200_v3 }
  0xd8   :  { %186 = vmatpush.msra.mxu1 %v153_v62  ;;  %230 = vmatpush.msra.mxu2 %v199_v7 }
  0xda   :  { %187 = vmatpush.msra.mxu1 %v152_v0  ;;  %231 = vmatpush.msra.mxu2 %v198_v8 }
  0xdb   :  { %188 = vmatmul.f32.vlgmr.msra.gmra.mxu1 %v150_v1 }
  0xdc   :  { %232 = vmatpush.msra.mxu2 %v197_v9 }
  0xe3   :  { %191 = vmatmul.f32.gmra.mxu1 %v151_v6 }
 0x158   :  { %v189_v11 = vpop.f32.mrf.mxu1 }
 0x159   :  { %v190_v12 = vadd.f32 %v359_v10, %v189_v11 }
 0x15b   :  { %v195_v13 = vmax.f32 %v190_v12, 0.0 }
 0x15d   :  { %233 = vmatmul.f32.vlgmr.msra.gmra.mxu2 %v195_v13 }
 0x160   :  { %v192_v14 = vpop.f32.mrf.mxu1 }
 0x161   :  { %v193_v15 = vadd.f32 %v359_v10, %v192_v14 }
 0x163   :  { %v196_v16 = vmax.f32 %v193_v15, 0.0 }
 0x165   :  { %236 = vmatmul.f32.gmra.mxu2 %v196_v16 }
 0x1e0   :  { %v234_v17 = vpop.f32.mrf.mxu2 }
 0x1e1   :  { %v235_v19 = vadd.f32 %v360_v18, %v234_v17 }
 0x1e3   :  { %v240_v22 = vmax.f32 %v235_v19, 0.0 }
 0x1e8   :  { %v237_v20 = vpop.f32.mrf.mxu2 }
 0x1e9   :  { %v238_v21 = vadd.f32 %v360_v18, %v237_v20 }
 0x1eb   :  { %v241_v23 = vmax.f32 %v238_v21, 0.0 }
 0x1ed   :  { %v242_v24 = vadd.f32 %v241_v23, %v240_v22 }
 0x1ef   :  { %v243_v25 = vrot.slane %v242_v24, 4 }
 0x1f1   :  { %v244_v26 = vadd.f32 %v243_v25, %v242_v24 }
 0x1f3   :  { %v245_v27 = vrot.slane %v244_v26, 2 }
 0x1f5   :  { %v246_v28 = vadd.f32 %v245_v27, %v244_v26 }
 0x1f7   :  { %v247_v29 = vrot.slane %v246_v28, 1 }
 0x1f9   :  { %v248_v30 = vadd.f32 %v247_v29, %v246_v28 }
 0x1fb   :  { %v249_v31 = vmul.f32 0.0625, %v248_v30 }
 0x1fd   :  { %v250_v32 = vsub.f32 %v240_v22, %v249_v31  ;;  %v251_v33 = vsub.f32 %v241_v23, %v249_v31 }
 0x1ff   :  { %v252_v34 = vmul.f32 %v250_v32, %v250_v32  ;;  %v253_v35 = vmul.f32 %v251_v33, %v251_v33 }
 0x201   :  { %v254_v36 = vadd.f32 %v253_v35, %v252_v34 }
 0x203   :  { %v255_v37 = vrot.slane %v254_v36, 4 }
 0x205   :  { %v256_v38 = vadd.f32 %v255_v37, %v254_v36 }
 0x207   :  { %v257_v39 = vrot.slane %v256_v38, 2 }
 0x209   :  { %v258_v40 = vadd.f32 %v257_v39, %v256_v38 }
 0x20b   :  { %v259_v41 = vrot.slane %v258_v40, 1 }
 0x20d   :  { %v260_v42 = vadd.f32 %v259_v41, %v258_v40 }
 0x20f   :  { %v261_v43 = vmul.f32 0.0625, %v260_v42 }
 0x211   :  { %v263_v44 = vadd.f32 1e-05, %v261_v43 }
 0x213   :  { %362 = vrsqrt.f32 %v263_v44  ;;  %vm270_vm1 = vweird.f32 %v263_v44 }
 0x219   :  { %v363_v45 = vpop.eup %362 }
 0x21a   :  { %v265_v46 = vmul.f32 %v363_v45, %v263_v44  ;;  %vm271_vm0 = vweird.f32 %v363_v45 }
 0x21b   :  { %vm272_vm2 = vmor %vm270_vm1, %vm271_vm0 }
 0x21c   :  { %v266_v47 = vmul.f32 %v363_v45, %v265_v46 }
 0x21e   :  { %v267_v48 = vmul.f32 0.5, %v266_v47 }
 0x220   :  { %v268_v49 = vsub.f32 1.5, %v267_v48 }
 0x222   :  { %v269_v51 = vmul.f32 %v363_v45, %v268_v49 }
 0x224   :  { %v273_v52 = vsel %vm272_vm2, %v363_v45, %v269_v51 }
 0x225   :  { %v274_v53 = vmul.f32 %v273_v52, %v262_v50 }
 0x227   :  { %v276_v54 = vperm.slane %v274_v53, 0 }
 0x229   :  { %v279_v56 = vmul.f32 %v276_v54, %v251_v33  ;;  %v278_v57 = vmul.f32 %v276_v54, %v250_v32 }
 0x22b   :  { %v285_v58 = vadd.f32 %v361_v55, %v279_v56  ;;  %v284_v59 = vadd.f32 %v361_v55, %v278_v57 }
 0x22d   :  { %287 = vst [vmem:[%s686_s13 + $0x8] sm:$0xff] %v285_v58  ;;  %307 = vmatpush.msrb.mxu3 %v285_v58 }
 0x22e   :  { %286 = vst [vmem:[%s686_s13] sm:$0xff] %v284_v59 }
 0x22f   :  { %308 = vmatpush.msrb.mxu3 %v284_v59 }
 0x230   :  { %330 = vmatmul.msk.f32.vlgmr.msrb.gmra.mxu3 %vm289_vm3, %v288_v60 }
 0x2b3   :  { %v310_v61 = vpop.f32.mrf.mxu3 }
 0x2b4   :  { %313 = vst [vmem:[%s687_s14] sm:$0x3] %v310_v61 }

</bundles_post_ra>
